<compile_context>
chip_gen: v7x
topology: tpu7x:2x2x1
jax: 0.10.0
libtpu: 0.0.40
codegen_flags: <defaults>
</compile_context>

<pallas_src>
import functools

import jax
import jax.numpy as jnp
import numpy as np
from jax.experimental import pallas as pl
from jax.experimental.pallas import tpu as pltpu

LANE = 128                        # feature dims padded to the 128-lane width
FUSED_MAX_NODES = 2048            # <= this many nodes: run all 3 layers fused in VMEM
X_RESIDENT_MAX_BYTES = 4 << 20    # keep X fully VMEM-resident below this size
VMEM_LIMIT_BYTES = 32 * 1024 * 1024


def _round_up(x, m):
    return ((x + m - 1) // m) * m


def _pad2d(a, rows, cols):
    return jnp.pad(a, ((0, rows - a.shape[0]), (0, cols - a.shape[1])))


def _choose_tile(n, max_tile=1024):
    """Largest tile in {1024,512,256} (<= max_tile) keeping >= 4 row tiles, so the
    parallel row axis still feeds both v7x TensorCores; fall back to 256."""
    for t in (1024, 512, 256):
        if t > max_tile:
            continue
        n_pad = _round_up(n, t)
        if n_pad // t >= 4:
            return t, n_pad
    return 256, _round_up(n, 256)


# ---------------------------------------------------------------------------
# Normalized adjacency A_hat = D^{-1/2} (A + I) D^{-1/2}, dense, zero-padded to
# (n_pad, n_pad), built directly in the requested storage dtype.
# Matches PyG gcn_norm with add_remaining_self_loops: existing self-loops keep
# their weight (set, not add), missing ones get weight 1.
# ---------------------------------------------------------------------------
def build_norm_adj(edge_index, edge_weight, num_nodes, n_pad, dtype=jnp.bfloat16):
    src = edge_index[0]
    dst = edge_index[1]
    w = edge_weight.astype(jnp.float32)
    is_loop = src == dst

    # Drop existing self-loop edges from the edge list ...
    w_edges = jnp.where(is_loop, 0.0, w)
    # ... and fold their weight into the per-node loop weight (fill value 1).
    loop_idx = jnp.where(is_loop, src, num_nodes)             # OOB index -> dropped
    loop_w = jnp.ones((num_nodes,), jnp.float32)
    loop_w = loop_w.at[loop_idx].set(jnp.where(is_loop, w, 1.0), mode="drop")

    deg = jnp.zeros((num_nodes,), jnp.float32).at[dst].add(w_edges) + loop_w
    dinv = jnp.where(deg > 0.0, jax.lax.rsqrt(deg), 0.0)

    norm_e = dinv[src] * w_edges * dinv[dst]
    norm_l = dinv * loop_w * dinv

    # message j(src) -> i(dst): A_hat[i, j] = norm.  Scatter directly in storage
    # dtype to avoid an extra O(N^2) cast pass.
    a = jnp.zeros((n_pad, n_pad), dtype).at[dst, src].add(norm_e.astype(dtype))
    diag = jnp.arange(num_nodes)
    a = a.at[diag, diag].add(norm_l.astype(dtype))
    return a


# ---------------------------------------------------------------------------
# Fused path: whole 3-layer forward in one kernel (A_hat + activations resident).
# ---------------------------------------------------------------------------
def gcn_fused_kernel(a_ref, x_ref, w1_ref, b1_ref, w2_ref, b2_ref, w3_ref, b3_ref,
                     out_ref):
    a = a_ref[...]                                            # bf16, resident

    # conv1 + ReLU  (dropout p=0.1 -> identity in eval mode)
    agg = jnp.dot(a, x_ref[...], preferred_element_type=jnp.float32)
    h = jnp.dot(agg.astype(jnp.bfloat16), w1_ref[...],
                preferred_element_type=jnp.float32)
    h = jnp.maximum(h + b1_ref[...], 0.0)

    # conv2 + ReLU  (dropout -> identity)
    agg = jnp.dot(a, h.astype(jnp.bfloat16), preferred_element_type=jnp.float32)
    h = jnp.dot(agg.astype(jnp.bfloat16), w2_ref[...],
                preferred_element_type=jnp.float32)
    h = jnp.maximum(h + b2_ref[...], 0.0)

    # conv3
    agg = jnp.dot(a, h.astype(jnp.bfloat16), preferred_element_type=jnp.float32)
    h = jnp.dot(agg.astype(jnp.bfloat16), w3_ref[...],
                preferred_element_type=jnp.float32)
    out_ref[...] = h + b3_ref[...]


def gcn_fused(a_hat, x, w1, b1, w2, b2, w3, b3):
    n_pad = a_hat.shape[0]
    f_in, f_hid = w1.shape
    f_out = w3.shape[1]

    flops = (2 * n_pad * n_pad * (f_in + 2 * f_hid)
             + 2 * n_pad * (f_in * f_hid + f_hid * f_hid + f_hid * f_out))
    bytes_accessed = int(
        a_hat.size * a_hat.dtype.itemsize + x.size * x.dtype.itemsize
        + (w1.size + w2.size + w3.size) * 2 + (b1.size + b2.size + b3.size) * 4
        + n_pad * f_out * 4)

    return pl.pallas_call(
        gcn_fused_kernel,
        out_shape=jax.ShapeDtypeStruct((n_pad, f_out), jnp.float32),
        compiler_params=pltpu.CompilerParams(vmem_limit_bytes=VMEM_LIMIT_BYTES),
        cost_estimate=pl.CostEstimate(flops=flops, transcendentals=0,
                                      bytes_accessed=bytes_accessed),
    )(a_hat, x, w1, b1, w2, b2, w3, b3)


# ---------------------------------------------------------------------------
# Tiled path: one GCNConv layer per pallas_call, grid = (row tiles, K tiles).
#   out[i-block] = maybe_relu( (sum_k A[i,k] @ X[k]) @ W + b )
# ---------------------------------------------------------------------------
def gcn_layer_kernel(a_ref, x_ref, w_ref, b_ref, out_ref, acc_ref, *,
                     apply_relu, x_resident, tile):
    k = pl.program_id(1)

    @pl.when(k == 0)
    def _init():
        acc_ref[...] = jnp.zeros_like(acc_ref)

    if x_resident:
        # X is fully VMEM-resident; slice out the rows of this K block.
        off = pl.multiple_of(k * tile, tile)
        x_blk = x_ref[pl.ds(off, tile), :]
    else:
        x_blk = x_ref[...]

    # Neighborhood aggregation: bf16 x bf16 MXU matmul, f32 accumulation.
    acc_ref[...] += jnp.dot(a_ref[...], x_blk, preferred_element_type=jnp.float32)

    @pl.when(k == pl.num_programs(1) - 1)
    def _finalize():
        # Dense transform: downcast to bf16 only right before the MXU dot;
        # bias add / ReLU stay in f32; store in the output's dtype.
        h = jnp.dot(acc_ref[...].astype(jnp.bfloat16), w_ref[...],
                    preferred_element_type=jnp.float32)
        h = h + b_ref[...]
        if apply_relu:
            h = jnp.maximum(h, 0.0)
        out_ref[...] = h.astype(out_ref.dtype)


def gcn_layer(a_hat, x, w, b, *, tile, apply_relu, out_dtype):
    """One GCNConv layer on padded operands.

    a_hat : (n_pad, n_pad) bf16   normalized adjacency (zero-padded rows/cols)
    x     : (n_pad, f_in)  bf16   node features (lane-padded)
    w     : (f_in, f_out)  bf16
    b     : (1, f_out)     f32
    """
    n_pad = a_hat.shape[0]
    f_in = x.shape[1]
    f_out = w.shape[1]
    n_tiles = n_pad // tile

    x_bytes = x.size * x.dtype.itemsize
    x_resident = x_bytes <= X_RESIDENT_MAX_BYTES
    if x_resident:
        x_spec = pl.BlockSpec((n_pad, f_in), lambda i, k: (0, 0))   # single DMA
        x_reads = 1
    else:
        x_spec = pl.BlockSpec((tile, f_in), lambda i, k: (k, 0))    # streamed
        x_reads = n_tiles

    flops = 2 * n_pad * n_pad * f_in + 2 * n_pad * f_in * f_out
    bytes_accessed = int(
        a_hat.size * a_hat.dtype.itemsize
        + x_reads * x_bytes
        + w.size * w.dtype.itemsize + b.size * b.dtype.itemsize
        + n_pad * f_out * jnp.dtype(out_dtype).itemsize)

    kernel = functools.partial(gcn_layer_kernel, apply_relu=apply_relu,
                               x_resident=x_resident, tile=tile)
    return pl.pallas_call(
        kernel,
        out_shape=jax.ShapeDtypeStruct((n_pad, f_out), out_dtype),
        grid_spec=pltpu.PrefetchScalarGridSpec(
            num_scalar_prefetch=0,
            grid=(n_tiles, n_tiles),
            in_specs=[
                pl.BlockSpec((tile, tile), lambda i, k: (i, k)),    # A_hat tile
                x_spec,                                             # X (resident or K block)
                pl.BlockSpec((f_in, f_out), lambda i, k: (0, 0)),   # W (resident)
                pl.BlockSpec((1, f_out), lambda i, k: (0, 0)),      # bias (resident)
            ],
            out_specs=pl.BlockSpec((tile, f_out), lambda i, k: (i, 0)),
            scratch_shapes=[pltpu.VMEM((tile, f_in), jnp.float32)],
        ),
        compiler_params=pltpu.CompilerParams(
            dimension_semantics=("parallel", "arbitrary"),
            vmem_limit_bytes=VMEM_LIMIT_BYTES,
        ),
        cost_estimate=pl.CostEstimate(flops=flops, transcendentals=0,
                                      bytes_accessed=bytes_accessed),
    )(a_hat, x, w, b)


# ---------------------------------------------------------------------------
# Full forward: conv1+relu -> conv2+relu -> conv3 -> (node_emb, graph_emb)
# ---------------------------------------------------------------------------
def gcn_forward(x, edge_index, edge_weight, params, *,
                fused_max_nodes=FUSED_MAX_NODES, max_tile=1024):
    (w1, b1, w2, b2, w3, b3) = params
    n, in_dim = x.shape
    hid_dim = w1.shape[1]
    out_dim = w3.shape[1]

    use_fused = n <= fused_max_nodes
    if use_fused:
        n_pad = _round_up(max(n, 8), LANE)
        tile = None
    else:
        tile, n_pad = _choose_tile(n, max_tile)

    in_pad = _round_up(in_dim, LANE)
    hid_pad = _round_up(hid_dim, LANE)
    out_pad = _round_up(out_dim, LANE)

    a_hat = build_norm_adj(edge_index, edge_weight, n, n_pad, dtype=jnp.bfloat16)

    x_p = _pad2d(x, n_pad, in_pad).astype(jnp.bfloat16)
    w1_p = _pad2d(w1, in_pad, hid_pad).astype(jnp.bfloat16)
    w2_p = _pad2d(w2, hid_pad, hid_pad).astype(jnp.bfloat16)
    w3_p = _pad2d(w3, hid_pad, out_pad).astype(jnp.bfloat16)
    b1_p = _pad2d(b1, 1, hid_pad)
    b2_p = _pad2d(b2, 1, hid_pad)
    b3_p = _pad2d(b3, 1, out_pad)

    if use_fused:
        h = gcn_fused(a_hat, x_p, w1_p, b1_p, w2_p, b2_p, w3_p, b3_p)
    else:
        # conv1 + ReLU  (dropout p=0.1 -> identity in eval mode); bf16 output
        h = gcn_layer(a_hat, x_p, w1_p, b1_p, tile=tile, apply_relu=True,
                      out_dtype=jnp.bfloat16)
        # conv2 + ReLU  (dropout -> identity); bf16 output, no wrapper cast
        h = gcn_layer(a_hat, h, w2_p, b2_p, tile=tile, apply_relu=True,
                      out_dtype=jnp.bfloat16)
        # conv3; f32 output
        h = gcn_layer(a_hat, h, w3_p, b3_p, tile=tile, apply_relu=False,
                      out_dtype=jnp.float32)

    node_emb = h[:n, :out_dim].astype(jnp.float32)
    # global_mean_pool with a single graph == mean over the *true* nodes; done on
    # the sliced embeddings so padded rows never pollute the mean.
    graph_emb = jnp.mean(node_emb, axis=0, keepdims=True)
    return node_emb, graph_emb


# ---------------------------------------------------------------------------
# Pure-JAX f32 reference (same math, no padding / bf16) for a tolerance check.
# ---------------------------------------------------------------------------
def gcn_reference(x, edge_index, edge_weight, params):
    (w1, b1, w2, b2, w3, b3) = params
    n = x.shape[0]
    a = build_norm_adj(edge_index, edge_weight, n, n, dtype=jnp.float32)

    def layer(h, w, b, relu):
        h = a @ h @ w + b
        return jnp.maximum(h, 0.0) if relu else h

    h = layer(x, w1, b1, True)
    h = layer(h, w2, b2, True)
    h = layer(h, w3, b3, False)
    return h, jnp.mean(h, axis=0, keepdims=True)


def init_params(key, input_dim, hidden_dim, output_dim):
    ks = jax.random.split(key, 3)

    def glorot(k, fan_in, fan_out):
        scale = jnp.sqrt(6.0 / (fan_in + fan_out))
        return jax.random.uniform(k, (fan_in, fan_out), jnp.float32, -scale, scale)

    w1 = glorot(ks[0], input_dim, hidden_dim)
    b1 = jnp.zeros((1, hidden_dim), jnp.float32)
    w2 = glorot(ks[1], hidden_dim, hidden_dim)
    b2 = jnp.zeros((1, hidden_dim), jnp.float32)
    w3 = glorot(ks[2], hidden_dim, output_dim)
    b3 = jnp.zeros((1, output_dim), jnp.float32)
    return (w1, b1, w2, b2, w3, b3)


if __name__ == "__main__":
    INPUT_DIM, HIDDEN_DIM, OUTPUT_DIM = 16, 64, 32
    N_NODES, N_EDGES = 8, 16

    key = jax.random.PRNGKey(0)
    k_x, k_e, k_w, k_p = jax.random.split(key, 4)

    # data.x, data.edge_index, data.edge_attr.squeeze()
    x = jax.random.normal(k_x, (N_NODES, INPUT_DIM), jnp.float32)
    edge_index = jax.random.randint(k_e, (2, N_EDGES), 0, N_NODES, jnp.int32)
    edge_weight = jax.random.uniform(k_w, (N_EDGES,), jnp.float32, 0.1, 1.0)

    params = init_params(k_p, INPUT_DIM, HIDDEN_DIM, OUTPUT_DIM)

    fwd = jax.jit(gcn_forward, static_argnames=("fused_max_nodes", "max_tile"))

    # --- small graph: fused single-kernel path ---
    node_emb, graph_emb = fwd(x, edge_index, edge_weight, params)
    jax.block_until_ready((node_emb, graph_emb))
    assert node_emb.shape == (N_NODES, OUTPUT_DIM)
    assert graph_emb.shape == (1, OUTPUT_DIM)

    ref_node, ref_graph = gcn_reference(x, edge_index, edge_weight, params)
    np.testing.assert_allclose(np.asarray(node_emb), np.asarray(ref_node),
                               atol=0.1, rtol=0.1)
    np.testing.assert_allclose(np.asarray(graph_emb), np.asarray(ref_graph),
                               atol=0.1, rtol=0.1)

    # --- larger graph: exercise the tiled (per-layer) path too ---
    N2, E2 = 300, 1200
    k2x, k2e, k2w = jax.random.split(jax.random.PRNGKey(1), 3)
    x2 = jax.random.normal(k2x, (N2, INPUT_DIM), jnp.float32)
    ei2 = jax.random.randint(k2e, (2, E2), 0, N2, jnp.int32)
    ew2 = jax.random.uniform(k2w, (E2,), jnp.float32, 0.1, 1.0)

    node2, graph2 = fwd(x2, ei2, ew2, params, fused_max_nodes=0)
    jax.block_until_ready((node2, graph2))
    assert node2.shape == (N2, OUTPUT_DIM)
    assert graph2.shape == (1, OUTPUT_DIM)

    ref_node2, ref_graph2 = gcn_reference(x2, ei2, ew2, params)
    np.testing.assert_allclose(np.asarray(node2), np.asarray(ref_node2),
                               atol=0.1, rtol=0.1)
    np.testing.assert_allclose(np.asarray(graph2), np.asarray(ref_graph2),
                               atol=0.1, rtol=0.1)

    print("KERNEL_OK")
</pallas_src>

<mosaic_0001>
module attributes {stable_mosaic.version = 11 : i64} {
  func.func private @main(%arg0: i32) attributes {dimension_semantics = [#tpu.dimension_semantics<core_parallel>], iteration_bounds = array<i64: 2>, tpu.core_type = #tpu.core_type<sc_scalar_subcore>, window_params = []} {
    return
  }
}

module attributes {stable_mosaic.version = 11 : i64} {
  func.func private @main(%arg0: i32) attributes {dimension_semantics = [#tpu.dimension_semantics<core_parallel>], iteration_bounds = array<i64: 2>, tpu.core_type = #tpu.core_type<sc_scalar_subcore>, window_params = []} {
    return
  }
}

module attributes {stable_mosaic.version = 11 : i64} {
  func.func @gcn_fused_kernel(%arg0: memref<128x128xbf16, #tpu.memory_space<vmem>>, %arg1: memref<128x128xbf16, #tpu.memory_space<vmem>>, %arg2: memref<128x128xbf16, #tpu.memory_space<vmem>>, %arg3: memref<1x128xf32, #tpu.memory_space<vmem>>, %arg4: memref<128x128xbf16, #tpu.memory_space<vmem>>, %arg5: memref<1x128xf32, #tpu.memory_space<vmem>>, %arg6: memref<128x128xbf16, #tpu.memory_space<vmem>>, %arg7: memref<1x128xf32, #tpu.memory_space<vmem>>, %arg8: memref<128x128xf32, #tpu.memory_space<vmem>>) attributes {dimension_semantics = [], scalar_prefetch = 0 : i64, scratch_operands = 0 : i64, tpu.core_type = #tpu.core_type<tc>} {
    %c0 = arith.constant 0 : index
    %c0_0 = arith.constant 0 : index
    %0 = vector.load %arg0[%c0, %c0_0] : memref<128x128xbf16, #tpu.memory_space<vmem>>, vector<128x128xbf16>
    %c0_1 = arith.constant 0 : index
    %c0_2 = arith.constant 0 : index
    %1 = vector.load %arg1[%c0_1, %c0_2] : memref<128x128xbf16, #tpu.memory_space<vmem>>, vector<128x128xbf16>
    %cst = arith.constant dense<0.000000e+00> : vector<128x128xf32>
    %2 = tpu.matmul %0, %1, %cst {dimension_numbers = #tpu.dot_dimension_numbers<[1], [0], [0], [1], [0, 0, 1, 1], [], []>} : vector<128x128xbf16>, vector<128x128xbf16>, vector<128x128xf32> -> vector<128x128xf32>
    %3 = arith.truncf %2 : vector<128x128xf32> to vector<128x128xbf16>
    %c0_3 = arith.constant 0 : index
    %c0_4 = arith.constant 0 : index
    %4 = vector.load %arg2[%c0_3, %c0_4] : memref<128x128xbf16, #tpu.memory_space<vmem>>, vector<128x128xbf16>
    %cst_5 = arith.constant dense<0.000000e+00> : vector<128x128xf32>
    %5 = tpu.matmul %3, %4, %cst_5 {dimension_numbers = #tpu.dot_dimension_numbers<[1], [0], [0], [1], [0, 0, 1, 1], [], []>} : vector<128x128xbf16>, vector<128x128xbf16>, vector<128x128xf32> -> vector<128x128xf32>
    %c0_6 = arith.constant 0 : index
    %c0_7 = arith.constant 0 : index
    %6 = vector.load %arg3[%c0_6, %c0_7] : memref<1x128xf32, #tpu.memory_space<vmem>>, vector<1x128xf32>
    %7 = vector.broadcast %6 : vector<1x128xf32> to vector<128x128xf32>
    %8 = arith.addf %5, %7 : vector<128x128xf32>
    %cst_8 = arith.constant 0.000000e+00 : f32
    %9 = vector.broadcast %cst_8 : f32 to vector<128x128xf32>
    %10 = arith.maximumf %8, %9 : vector<128x128xf32>
    %11 = arith.truncf %10 : vector<128x128xf32> to vector<128x128xbf16>
    %cst_9 = arith.constant dense<0.000000e+00> : vector<128x128xf32>
    %12 = tpu.matmul %0, %11, %cst_9 {dimension_numbers = #tpu.dot_dimension_numbers<[1], [0], [0], [1], [0, 0, 1, 1], [], []>} : vector<128x128xbf16>, vector<128x128xbf16>, vector<128x128xf32> -> vector<128x128xf32>
    %13 = arith.truncf %12 : vector<128x128xf32> to vector<128x128xbf16>
    %c0_10 = arith.constant 0 : index
    %c0_11 = arith.constant 0 : index
    %14 = vector.load %arg4[%c0_10, %c0_11] : memref<128x128xbf16, #tpu.memory_space<vmem>>, vector<128x128xbf16>
    %cst_12 = arith.constant dense<0.000000e+00> : vector<128x128xf32>
    %15 = tpu.matmul %13, %14, %cst_12 {dimension_numbers = #tpu.dot_dimension_numbers<[1], [0], [0], [1], [0, 0, 1, 1], [], []>} : vector<128x128xbf16>, vector<128x128xbf16>, vector<128x128xf32> -> vector<128x128xf32>
    %c0_13 = arith.constant 0 : index
    %c0_14 = arith.constant 0 : index
    %16 = vector.load %arg5[%c0_13, %c0_14] : memref<1x128xf32, #tpu.memory_space<vmem>>, vector<1x128xf32>
    %17 = vector.broadcast %16 : vector<1x128xf32> to vector<128x128xf32>
    %18 = arith.addf %15, %17 : vector<128x128xf32>
    %cst_15 = arith.constant 0.000000e+00 : f32
    %19 = vector.broadcast %cst_15 : f32 to vector<128x128xf32>
    %20 = arith.maximumf %18, %19 : vector<128x128xf32>
    %21 = arith.truncf %20 : vector<128x128xf32> to vector<128x128xbf16>
    %cst_16 = arith.constant dense<0.000000e+00> : vector<128x128xf32>
    %22 = tpu.matmul %0, %21, %cst_16 {dimension_numbers = #tpu.dot_dimension_numbers<[1], [0], [0], [1], [0, 0, 1, 1], [], []>} : vector<128x128xbf16>, vector<128x128xbf16>, vector<128x128xf32> -> vector<128x128xf32>
    %23 = arith.truncf %22 : vector<128x128xf32> to vector<128x128xbf16>
    %c0_17 = arith.constant 0 : index
    %c0_18 = arith.constant 0 : index
    %24 = vector.load %arg6[%c0_17, %c0_18] : memref<128x128xbf16, #tpu.memory_space<vmem>>, vector<128x128xbf16>
    %cst_19 = arith.constant dense<0.000000e+00> : vector<128x128xf32>
    %25 = tpu.matmul %23, %24, %cst_19 {dimension_numbers = #tpu.dot_dimension_numbers<[1], [0], [0], [1], [0, 0, 1, 1], [], []>} : vector<128x128xbf16>, vector<128x128xbf16>, vector<128x128xf32> -> vector<128x128xf32>
    %c0_20 = arith.constant 0 : index
    %c0_21 = arith.constant 0 : index
    %26 = vector.load %arg7[%c0_20, %c0_21] : memref<1x128xf32, #tpu.memory_space<vmem>>, vector<1x128xf32>
    %27 = vector.broadcast %26 : vector<1x128xf32> to vector<128x128xf32>
    %28 = arith.addf %25, %27 : vector<128x128xf32>
    %c0_22 = arith.constant 0 : index
    %c0_23 = arith.constant 0 : index
    %29 = vector.load %arg8[%c0_22, %c0_23] : memref<128x128xf32, #tpu.memory_space<vmem>>, vector<128x128xf32>
    tpu.vector_store %arg8[%c0_22, %c0_23], %28 {strides = array<i32>} : memref<128x128xf32, #tpu.memory_space<vmem>>, vector<128x128xf32>,
    return
  }
}

</mosaic_0001>

<bundles_post_ra>
// kernel: gcn_forward.1
= control target key start
LH: loop header
LB: loop body
LE: loop exit
PB: predicated region body
PF: predicated region fallthrough
CT: control target
= control target key end

     0   :  { %s1678_s1 = inlined_call_operand.vmem [shape: bf16[128,128], index: 1, kind: input, shape index: {}]   ;;  %s1679_s0 = inlined_call_operand.vmem [shape: bf16[128,128], index: 0, kind: input, shape index: {}]   ;;  %s1680_s2 = inlined_call_operand.vmem [shape: bf16[128,128], index: 2, kind: input, shape index: {}]   ;;  %s1681_s4 = inlined_call_operand.vmem [shape: bf16[128,128], index: 4, kind: input, shape index: {}]   ;;  %s1682_s3 = inlined_call_operand.vmem [shape: f32[1,128], index: 3, kind: input, shape index: {}]   ;;  %s1683_s6 = inlined_call_operand.vmem [shape: bf16[128,128], index: 6, kind: input, shape index: {}]   ;;  %s1684_s5 = inlined_call_operand.vmem [shape: f32[1,128], index: 5, kind: input, shape index: {}]   ;;  %s1685_s7 = inlined_call_operand.vmem [shape: f32[1,128], index: 7, kind: input, shape index: {}]   ;;  %s1686_s8 = inlined_call_operand.vmem [shape: f32[128,128], index: 8, kind: output, shape index: {}]  }
   0x1   :  { %v1376_v0 = vld [vmem:[%s1678_s1] sm:$0xff]   ;;  %v1377_v1 = vld [vmem:[%s1678_s1 + $0x8] sm:$0xff]   ;;  %v1378_v2 = vld [vmem:[%s1678_s1 + $0x10] sm:$0xff]  }
   0x2   :  { %1184 = vmatprep.subr.bf16.mxu0 %v1376_v0  ;;  %v1379_v3 = vld [vmem:[%s1678_s1 + $0x18] sm:$0xff]   ;;  %v1476_v4 = vld [vmem:[%s1679_s0] sm:$0xff]   ;;  %v1381_v6 = vld [vmem:[%s1678_s1 + $0x28] sm:$0xff]  }
   0x3   :  { %1185 = vmatpush3.bf16.msra.mxu0 %v1376_v0  ;;  %1200 = vmatprep.mubr.bf16.mxu0 %v1476_v4  ;;  %v1380_v5 = vld [vmem:[%s1678_s1 + $0x20] sm:$0xff]   ;;  %v1393_v8 = vld [vmem:[%s1680_s2 + $0x8] sm:$0xff]   ;;  %v1382_v9 = vld [vmem:[%s1678_s1 + $0x30] sm:$0xff]  }
   0x4   :  { %1186 = vmatprep.subr.bf16.mxu0 %v1377_v1  ;;  %v1392_v7 = vld [vmem:[%s1680_s2] sm:$0xff]   ;;  %v1394_v10 = vld [vmem:[%s1680_s2 + $0x10] sm:$0xff]   ;;  %v1383_v11 = vld [vmem:[%s1678_s1 + $0x38] sm:$0xff]  }
   0x5   :  { %1216 = vmatprep.subr.bf16.mxu1 %v1392_v7  ;;  %v1395_v12 = vld [vmem:[%s1680_s2 + $0x18] sm:$0xff]   ;;  %v1396_v13 = vld [vmem:[%s1680_s2 + $0x20] sm:$0xff]   ;;  %v1509_v14 = vld [vmem:[%s1679_s0 + $0x8] sm:$0xff]  }
   0x6   :  { %1217 = vmatpush3.bf16.msra.mxu1 %v1392_v7  ;;  %v1514_v15 = vld [vmem:[%s1679_s0 + $0x10] sm:$0xff]   ;;  %v1397_v16 = vld [vmem:[%s1680_s2 + $0x28] sm:$0xff]   ;;  %v1527_v18 = vld [vmem:[%s1679_s0 + $0x18] sm:$0xff]  }
   0x7   :  { %1187 = vmatpush3.bf16.msra.mxu0 %v1377_v1  ;;  %1218 = vmatprep.subr.bf16.mxu1 %v1393_v8  ;;  %v1398_v17 = vld [vmem:[%s1680_s2 + $0x30] sm:$0xff]   ;;  %v1532_v19 = vld [vmem:[%s1679_s0 + $0x20] sm:$0xff]   ;;  %v1539_v20 = vld [vmem:[%s1679_s0 + $0x28] sm:$0xff]  }
   0x8   :  { %1188 = vmatprep.subr.bf16.mxu0 %v1378_v2  ;;  %v1544_v21 = vld [vmem:[%s1679_s0 + $0x30] sm:$0xff]   ;;  %v1551_v22 = vld [vmem:[%s1679_s0 + $0x38] sm:$0xff]   ;;  %v1400_v48 = vld [vmem:[%s1681_s4] sm:$0xff]  }
   0x9   :  { %v1399_v23 = vld [vmem:[%s1680_s2 + $0x38] sm:$0xff]   ;;  %v1401_v49 = vld [vmem:[%s1681_s4 + $0x8] sm:$0xff]   ;;  %v1402_v50 = vld [vmem:[%s1681_s4 + $0x10] sm:$0xff]  }
   0xa   :  { %1219 = vmatpush3.bf16.msra.mxu1 %v1393_v8  ;;  %v1403_v51 = vld [vmem:[%s1681_s4 + $0x18] sm:$0xff]   ;;  %v1404_v52 = vld [vmem:[%s1681_s4 + $0x20] sm:$0xff]   ;;  %v1405_v53 = vld [vmem:[%s1681_s4 + $0x28] sm:$0xff]  }
   0xb   :  { %1189 = vmatpush3.bf16.msra.mxu0 %v1378_v2  ;;  %1220 = vmatprep.subr.bf16.mxu1 %v1394_v10  ;;  %v1406_v54 = vld [vmem:[%s1681_s4 + $0x30] sm:$0xff]   ;;  %v1061_v55 = vld [vmem:[%s1682_s3] ss:$0 sm:$0xff] }
   0xc   :  { %1190 = vmatprep.subr.bf16.mxu0 %v1379_v3 }
   0xe   :  { %1221 = vmatpush3.bf16.msra.mxu1 %v1394_v10 }
   0xf   :  { %1191 = vmatpush3.bf16.msra.mxu0 %v1379_v3  ;;  %1222 = vmatprep.subr.bf16.mxu1 %v1395_v12 }
  0x10   :  { %1192 = vmatprep.subr.bf16.mxu0 %v1380_v5 }
  0x12   :  { %1223 = vmatpush3.bf16.msra.mxu1 %v1395_v12 }
  0x13   :  { %1193 = vmatpush3.bf16.msra.mxu0 %v1380_v5  ;;  %1224 = vmatprep.subr.bf16.mxu1 %v1396_v13 }
  0x14   :  { %1194 = vmatprep.subr.bf16.mxu0 %v1381_v6 }
  0x16   :  { %1225 = vmatpush3.bf16.msra.mxu1 %v1396_v13 }
  0x17   :  { %1195 = vmatpush3.bf16.msra.mxu0 %v1381_v6  ;;  %1226 = vmatprep.subr.bf16.mxu1 %v1397_v16 }
  0x18   :  { %1196 = vmatprep.subr.bf16.mxu0 %v1382_v9 }
  0x1a   :  { %1227 = vmatpush3.bf16.msra.mxu1 %v1397_v16 }
  0x1b   :  { %1197 = vmatpush3.bf16.msra.mxu0 %v1382_v9  ;;  %1228 = vmatprep.subr.bf16.mxu1 %v1398_v17 }
  0x1c   :  { %1198 = vmatprep.subr.bf16.mxu0 %v1383_v11 }
  0x1e   :  { %1229 = vmatpush3.bf16.msra.mxu1 %v1398_v17 }
  0x1f   :  { %1199 = vmatpush3.bf16.msra.mxu0 %v1383_v11  ;;  %1230 = vmatprep.subr.bf16.mxu1 %v1399_v23 }
  0x22   :  { %1201 = vmatmul.mubr.bf16.vlgmr.msra.gmra.mrb[0].mxu0 %v1509_v14  ;;  %1231 = vmatpush3.bf16.msra.mxu1 %v1399_v23 }
  0x23   :  { %1204 = vmatprep.mubr.bf16.mxu0 %v1514_v15  ;;  %1280 = vmatprep.subr.bf16.mxu1 %v1400_v48 }
  0x2a   :  { %1205 = vmatmul.mubr.bf16.gmra.mrb[4].mxu0 %v1527_v18 }
  0x2b   :  { %1208 = vmatprep.mubr.bf16.mxu0 %v1532_v19 }
  0x32   :  { %1209 = vmatmul.mubr.bf16.gmra.mrb[8].mxu0 %v1539_v20 }
  0x33   :  { %1212 = vmatprep.mubr.bf16.mxu0 %v1544_v21 }
  0x3a   :  { %1213 = vmatmul.mubr.bf16.gmra.mrb[12].mxu0 %v1551_v22 }
  0x3b   :  { %1264 = vmatprep.mubr.bf16.mxu0 %v1476_v4 }
  0xf5   :  { %v1202_v24 = vpop.f32.mrb[0].mxu0 }
  0xf6   :  { %v192_v25 = vpop.f32.mrb[1].mxu0 }
  0xf7   :  { %v1203_v26 = vpop.f32.mrb[2].mxu0 }
  0xf8   :  { %v256_v27 = vpack.c.bf16 %v1203_v26, %v1202_v24  ;;  %v195_v28 = vpop.f32.mrb[3].mxu0 }
  0xf9   :  { %v255_v29 = vpack.c.bf16 %v195_v28, %v192_v25 }
  0xfb   :  { %1232 = vmatprep.mubr.bf16.mxu1 %v255_v29 }
  0xfc   :  { %1233 = vmatmul.mubr.bf16.vlgmr.msra.gmra.mrb[0].mxu1 %v256_v27 }
  0xfd   :  { %v1206_v30 = vpop.f32.mrb[4].mxu0  ;;  %1281 = vmatpush3.bf16.msra.mxu1 %v1400_v48 }
  0xfe   :  { %v208_v31 = vpop.f32.mrb[5].mxu0  ;;  %1282 = vmatprep.subr.bf16.mxu1 %v1401_v49 }
  0xff   :  { %v1207_v32 = vpop.f32.mrb[6].mxu0 }
 0x100   :  { %v258_v33 = vpack.c.bf16 %v1207_v32, %v1206_v30  ;;  %v211_v34 = vpop.f32.mrb[7].mxu0 }
 0x101   :  { %v257_v35 = vpack.c.bf16 %v211_v34, %v208_v31  ;;  %1283 = vmatpush3.bf16.msra.mxu1 %v1401_v49 }
 0x102   :  { %1284 = vmatprep.subr.bf16.mxu1 %v1402_v50 }
 0x103   :  { %1236 = vmatprep.mubr.bf16.mxu1 %v257_v35 }
 0x104   :  { %1237 = vmatmul.mubr.bf16.gmra.mrb[4].mxu1 %v258_v33 }
 0x105   :  { %v1210_v36 = vpop.f32.mrb[8].mxu0  ;;  %1285 = vmatpush3.bf16.msra.mxu1 %v1402_v50 }
 0x106   :  { %v224_v37 = vpop.f32.mrb[9].mxu0  ;;  %1286 = vmatprep.subr.bf16.mxu1 %v1403_v51 }
 0x107   :  { %v1211_v38 = vpop.f32.mrb[10].mxu0 }
 0x108   :  { %v260_v39 = vpack.c.bf16 %v1211_v38, %v1210_v36  ;;  %v227_v40 = vpop.f32.mrb[11].mxu0 }
 0x109   :  { %v259_v41 = vpack.c.bf16 %v227_v40, %v224_v37  ;;  %1287 = vmatpush3.bf16.msra.mxu1 %v1403_v51 }
 0x10a   :  { %1288 = vmatprep.subr.bf16.mxu1 %v1404_v52 }
 0x10b   :  { %1240 = vmatprep.mubr.bf16.mxu1 %v259_v41 }
 0x10c   :  { %1241 = vmatmul.mubr.bf16.gmra.mrb[8].mxu1 %v260_v39 }
 0x10d   :  { %v1214_v42 = vpop.f32.mrb[12].mxu0  ;;  %1289 = vmatpush3.bf16.msra.mxu1 %v1404_v52 }
 0x10e   :  { %v240_v43 = vpop.f32.mrb[13].mxu0  ;;  %1290 = vmatprep.subr.bf16.mxu1 %v1405_v53 }
 0x10f   :  { %v1215_v44 = vpop.f32.mrb[14].mxu0 }
 0x110   :  { %v262_v45 = vpack.c.bf16 %v1215_v44, %v1214_v42  ;;  %v243_v46 = vpop.f32.mrb[15].mxu0 }
 0x111   :  { %v261_v47 = vpack.c.bf16 %v243_v46, %v240_v43  ;;  %1291 = vmatpush3.bf16.msra.mxu1 %v1405_v53 }
 0x112   :  { %1292 = vmatprep.subr.bf16.mxu1 %v1406_v54 }
 0x113   :  { %1244 = vmatprep.mubr.bf16.mxu1 %v261_v47 }
 0x114   :  { %1245 = vmatmul.mubr.bf16.gmra.mrb[12].mxu1 %v262_v45 }
 0x115   :  { %1293 = vmatpush3.bf16.msra.mxu1 %v1406_v54 }
 0x1cf   :  { %v1234_v56 = vpop.f32.mrb[0].mxu1 }
 0x1d0   :  { %v377_v57 = vadd.f32 %v1234_v56, %v1061_v55  ;;  %v368_v58 = vpop.f32.mrb[1].mxu1 }
 0x1d1   :  { %v369_v59 = vadd.f32 %v1061_v55, %v368_v58  ;;  %v1235_v60 = vpop.f32.mrb[2].mxu1 }
 0x1d2   :  { %v380_v61 = vadd.f32 %v1235_v60, %v1061_v55  ;;  %v371_v62 = vpop.f32.mrb[3].mxu1  ;;  %v433_v0 = vmax.f32 %v377_v57, 0.0 }
 0x1d3   :  { %v372_v63 = vadd.f32 %v1061_v55, %v371_v62  ;;  %v431_v2 = vmax.f32 %v369_v59, 0.0 }
 0x1d4   :  { %v434_v1 = vmax.f32 %v380_v61, 0.0 }
 0x1d5   :  { %v432_v3 = vmax.f32 %v372_v63, 0.0 }
 0x1d6   :  { %v448_v5 = vpack.c.bf16 %v434_v1, %v433_v0 }
 0x1d7   :  { %v447_v6 = vpack.c.bf16 %v432_v3, %v431_v2  ;;  %v1238_v7 = vpop.f32.mrb[4].mxu1 }
 0x1d8   :  { %v393_v8 = vadd.f32 %v1238_v7, %v1061_v55  ;;  %v384_v9 = vpop.f32.mrb[5].mxu1 }
 0x1d9   :  { %v385_v10 = vadd.f32 %v1061_v55, %v384_v9  ;;  %v1239_v11 = vpop.f32.mrb[6].mxu1  ;;  %1248 = vmatprep.subr.bf16.mxu0 %v447_v6 }
 0x1da   :  { %v396_v12 = vadd.f32 %v1239_v11, %v1061_v55  ;;  %v387_v13 = vpop.f32.mrb[7].mxu1  ;;  %1249 = vmatpush3.bf16.msra.mxu0 %v447_v6  ;;  %v437_v17 = vmax.f32 %v393_v8, 0.0 }
 0x1db   :  { %v388_v16 = vadd.f32 %v1061_v55, %v387_v13  ;;  %1250 = vmatprep.subr.bf16.mxu0 %v448_v5  ;;  %v435_v24 = vmax.f32 %v385_v10, 0.0 }
 0x1dc   :  { %v438_v23 = vmax.f32 %v396_v12, 0.0 }
 0x1dd   :  { %v436_v25 = vmax.f32 %v388_v16, 0.0 }
 0x1de   :  { %v450_v26 = vpack.c.bf16 %v438_v23, %v437_v17  ;;  %1251 = vmatpush3.bf16.msra.mxu0 %v448_v5 }
 0x1df   :  { %v449_v27 = vpack.c.bf16 %v436_v25, %v435_v24  ;;  %v1242_v28 = vpop.f32.mrb[8].mxu1  ;;  %v1408_v24 = vld [vmem:[%s1683_s6] sm:$0xff]   ;;  %v1409_v25 = vld [vmem:[%s1683_s6 + $0x8] sm:$0xff]  }
 0x1e0   :  { %v409_v29 = vadd.f32 %v1242_v28, %v1061_v55  ;;  %v400_v30 = vpop.f32.mrb[9].mxu1  ;;  %v1412_v28 = vld [vmem:[%s1683_s6 + $0x20] sm:$0xff]  }
 0x1e1   :  { %v401_v31 = vadd.f32 %v1061_v55, %v400_v30  ;;  %v1243_v32 = vpop.f32.mrb[10].mxu1  ;;  %1252 = vmatprep.subr.bf16.mxu0 %v449_v27  ;;  %v1414_v30 = vld [vmem:[%s1683_s6 + $0x30] sm:$0xff]  }
 0x1e2   :  { %v412_v33 = vadd.f32 %v1243_v32, %v1061_v55  ;;  %v403_v34 = vpop.f32.mrb[11].mxu1  ;;  %1253 = vmatpush3.bf16.msra.mxu0 %v449_v27  ;;  %v441_v36 = vmax.f32 %v409_v29, 0.0  ;;  %v1411_v27 = vld [vmem:[%s1683_s6 + $0x18] sm:$0xff]   ;;  %v1413_v29 = vld [vmem:[%s1683_s6 + $0x28] sm:$0xff]  }
 0x1e3   :  { %v404_v35 = vadd.f32 %v1061_v55, %v403_v34  ;;  %1254 = vmatprep.subr.bf16.mxu0 %v450_v26  ;;  %v439_v38 = vmax.f32 %v401_v31, 0.0  ;;  %v1070_v31 = vld [vmem:[%s1684_s5] ss:$0 sm:$0xff] }
 0x1e4   :  { %v442_v37 = vmax.f32 %v412_v33, 0.0 }
 0x1e5   :  { %v440_v39 = vmax.f32 %v404_v35, 0.0 }
 0x1e6   :  { %v452_v40 = vpack.c.bf16 %v442_v37, %v441_v36  ;;  %1255 = vmatpush3.bf16.msra.mxu0 %v450_v26  ;;  %v1410_v26 = vld [vmem:[%s1683_s6 + $0x10] sm:$0xff]  }
 0x1e7   :  { %v451_v41 = vpack.c.bf16 %v440_v39, %v439_v38  ;;  %v1246_v42 = vpop.f32.mrb[12].mxu1 }
 0x1e8   :  { %v425_v43 = vadd.f32 %v1246_v42, %v1061_v55  ;;  %v416_v44 = vpop.f32.mrb[13].mxu1 }
 0x1e9   :  { %v417_v45 = vadd.f32 %v1061_v55, %v416_v44  ;;  %v1247_v46 = vpop.f32.mrb[14].mxu1  ;;  %1256 = vmatprep.subr.bf16.mxu0 %v451_v41 }
 0x1ea   :  { %v428_v47 = vadd.f32 %v1247_v46, %v1061_v55  ;;  %v419_v48 = vpop.f32.mrb[15].mxu1  ;;  %1257 = vmatpush3.bf16.msra.mxu0 %v451_v41  ;;  %v445_v50 = vmax.f32 %v425_v43, 0.0 }
 0x1eb   :  { %v420_v49 = vadd.f32 %v1061_v55, %v419_v48  ;;  %1258 = vmatprep.subr.bf16.mxu0 %v452_v40  ;;  %v443_v52 = vmax.f32 %v417_v45, 0.0  ;;  %v1407_v55 = vld [vmem:[%s1681_s4 + $0x38] sm:$0xff]  }
 0x1ec   :  { %v446_v51 = vmax.f32 %v428_v47, 0.0  ;;  %1294 = vmatprep.subr.bf16.mxu1 %v1407_v55 }
 0x1ed   :  { %v444_v53 = vmax.f32 %v420_v49, 0.0  ;;  %1295 = vmatpush3.bf16.msra.mxu1 %v1407_v55 }
 0x1ee   :  { %v454_v54 = vpack.c.bf16 %v446_v51, %v445_v50  ;;  %1259 = vmatpush3.bf16.msra.mxu0 %v452_v40  ;;  %1344 = vmatprep.subr.bf16.mxu1 %v1408_v24 }
 0x1ef   :  { %v453_v56 = vpack.c.bf16 %v444_v53, %v443_v52 }
 0x1f1   :  { %1260 = vmatprep.subr.bf16.mxu0 %v453_v56 }
 0x1f2   :  { %1261 = vmatpush3.bf16.msra.mxu0 %v453_v56 }
 0x1f3   :  { %1262 = vmatprep.subr.bf16.mxu0 %v454_v54 }
 0x1f6   :  { %1263 = vmatpush3.bf16.msra.mxu0 %v454_v54 }
 0x1f9   :  { %1265 = vmatmul.mubr.bf16.vlgmr.msra.gmra.mrb[16].mxu0 %v1509_v14 }
 0x1fa   :  { %1268 = vmatprep.mubr.bf16.mxu0 %v1514_v15 }
 0x201   :  { %1269 = vmatmul.mubr.bf16.gmra.mrb[20].mxu0 %v1527_v18 }
 0x202   :  { %1272 = vmatprep.mubr.bf16.mxu0 %v1532_v19 }
 0x209   :  { %1273 = vmatmul.mubr.bf16.gmra.mrb[24].mxu0 %v1539_v20 }
 0x20a   :  { %1276 = vmatprep.mubr.bf16.mxu0 %v1544_v21 }
 0x211   :  { %1277 = vmatmul.mubr.bf16.gmra.mrb[28].mxu0 %v1551_v22 }
 0x212   :  { %1328 = vmatprep.mubr.bf16.mxu0 %v1476_v4 }
 0x2cc   :  { %v1266_v57 = vpop.f32.mrb[16].mxu0 }
 0x2cd   :  { %v489_v58 = vpop.f32.mrb[17].mxu0 }
 0x2ce   :  { %v1267_v59 = vpop.f32.mrb[18].mxu0 }
 0x2cf   :  { %v553_v60 = vpack.c.bf16 %v1267_v59, %v1266_v57  ;;  %v492_v61 = vpop.f32.mrb[19].mxu0 }
 0x2d0   :  { %v552_v62 = vpack.c.bf16 %v492_v61, %v489_v58 }
 0x2d2   :  { %1296 = vmatprep.mubr.bf16.mxu1 %v552_v62 }
 0x2d3   :  { %1297 = vmatmul.mubr.bf16.vlgmr.msra.gmra.mrb[16].mxu1 %v553_v60 }
 0x2d4   :  { %v1270_v63 = vpop.f32.mrb[20].mxu0  ;;  %1345 = vmatpush3.bf16.msra.mxu1 %v1408_v24 }
 0x2d5   :  { %v505_v0 = vpop.f32.mrb[21].mxu0  ;;  %1346 = vmatprep.subr.bf16.mxu1 %v1409_v25 }
 0x2d6   :  { %v1271_v1 = vpop.f32.mrb[22].mxu0 }
 0x2d7   :  { %v555_v2 = vpack.c.bf16 %v1271_v1, %v1270_v63  ;;  %v508_v3 = vpop.f32.mrb[23].mxu0 }
 0x2d8   :  { %v554_v4 = vpack.c.bf16 %v508_v3, %v505_v0  ;;  %1347 = vmatpush3.bf16.msra.mxu1 %v1409_v25 }
 0x2d9   :  { %1348 = vmatprep.subr.bf16.mxu1 %v1410_v26 }
 0x2da   :  { %1300 = vmatprep.mubr.bf16.mxu1 %v554_v4 }
 0x2db   :  { %1301 = vmatmul.mubr.bf16.gmra.mrb[20].mxu1 %v555_v2 }
 0x2dc   :  { %v1274_v5 = vpop.f32.mrb[24].mxu0  ;;  %1349 = vmatpush3.bf16.msra.mxu1 %v1410_v26 }
 0x2dd   :  { %v521_v6 = vpop.f32.mrb[25].mxu0  ;;  %1350 = vmatprep.subr.bf16.mxu1 %v1411_v27 }
 0x2de   :  { %v1275_v7 = vpop.f32.mrb[26].mxu0 }
 0x2df   :  { %v557_v8 = vpack.c.bf16 %v1275_v7, %v1274_v5  ;;  %v524_v9 = vpop.f32.mrb[27].mxu0 }
 0x2e0   :  { %v556_v10 = vpack.c.bf16 %v524_v9, %v521_v6  ;;  %1351 = vmatpush3.bf16.msra.mxu1 %v1411_v27 }
 0x2e1   :  { %1352 = vmatprep.subr.bf16.mxu1 %v1412_v28 }
 0x2e2   :  { %1304 = vmatprep.mubr.bf16.mxu1 %v556_v10 }
 0x2e3   :  { %1305 = vmatmul.mubr.bf16.gmra.mrb[24].mxu1 %v557_v8 }
 0x2e4   :  { %v1278_v11 = vpop.f32.mrb[28].mxu0  ;;  %1353 = vmatpush3.bf16.msra.mxu1 %v1412_v28 }
 0x2e5   :  { %v537_v12 = vpop.f32.mrb[29].mxu0  ;;  %1354 = vmatprep.subr.bf16.mxu1 %v1413_v29 }
 0x2e6   :  { %v1279_v13 = vpop.f32.mrb[30].mxu0 }
 0x2e7   :  { %v559_v16 = vpack.c.bf16 %v1279_v13, %v1278_v11  ;;  %v540_v17 = vpop.f32.mrb[31].mxu0 }
 0x2e8   :  { %v558_v23 = vpack.c.bf16 %v540_v17, %v537_v12  ;;  %1355 = vmatpush3.bf16.msra.mxu1 %v1413_v29 }
 0x2e9   :  { %1356 = vmatprep.subr.bf16.mxu1 %v1414_v30 }
 0x2ea   :  { %1308 = vmatprep.mubr.bf16.mxu1 %v558_v23 }
 0x2eb   :  { %1309 = vmatmul.mubr.bf16.gmra.mrb[28].mxu1 %v559_v16 }
 0x2ec   :  { %1357 = vmatpush3.bf16.msra.mxu1 %v1414_v30 }
 0x3a6   :  { %v1298_v32 = vpop.f32.mrb[16].mxu1 }
 0x3a7   :  { %v674_v33 = vadd.f32 %v1298_v32, %v1070_v31  ;;  %v665_v34 = vpop.f32.mrb[17].mxu1 }
 0x3a8   :  { %v666_v35 = vadd.f32 %v1070_v31, %v665_v34  ;;  %v1299_v36 = vpop.f32.mrb[18].mxu1 }
 0x3a9   :  { %v677_v37 = vadd.f32 %v1299_v36, %v1070_v31  ;;  %v668_v38 = vpop.f32.mrb[19].mxu1  ;;  %v730_v40 = vmax.f32 %v674_v33, 0.0 }
 0x3aa   :  { %v669_v39 = vadd.f32 %v1070_v31, %v668_v38  ;;  %v728_v42 = vmax.f32 %v666_v35, 0.0 }
 0x3ab   :  { %v731_v41 = vmax.f32 %v677_v37, 0.0 }
 0x3ac   :  { %v729_v43 = vmax.f32 %v669_v39, 0.0 }
 0x3ad   :  { %v745_v44 = vpack.c.bf16 %v731_v41, %v730_v40 }
 0x3ae   :  { %v744_v45 = vpack.c.bf16 %v729_v43, %v728_v42  ;;  %v1302_v46 = vpop.f32.mrb[20].mxu1 }
 0x3af   :  { %v690_v47 = vadd.f32 %v1302_v46, %v1070_v31  ;;  %v681_v48 = vpop.f32.mrb[21].mxu1 }
 0x3b0   :  { %v682_v49 = vadd.f32 %v1070_v31, %v681_v48  ;;  %v1303_v50 = vpop.f32.mrb[22].mxu1  ;;  %1312 = vmatprep.subr.bf16.mxu0 %v744_v45 }
 0x3b1   :  { %v693_v51 = vadd.f32 %v1303_v50, %v1070_v31  ;;  %v684_v52 = vpop.f32.mrb[23].mxu1  ;;  %1313 = vmatpush3.bf16.msra.mxu0 %v744_v45  ;;  %v734_v54 = vmax.f32 %v690_v47, 0.0 }
 0x3b2   :  { %v685_v53 = vadd.f32 %v1070_v31, %v684_v52  ;;  %1314 = vmatprep.subr.bf16.mxu0 %v745_v44  ;;  %v732_v55 = vmax.f32 %v682_v49, 0.0  ;;  %v1079_v49 = vld [vmem:[%s1685_s7] ss:$0 sm:$0xff] }
 0x3b3   :  { %v735_v56 = vmax.f32 %v693_v51, 0.0 }
 0x3b4   :  { %v733_v57 = vmax.f32 %v685_v53, 0.0 }
 0x3b5   :  { %v747_v58 = vpack.c.bf16 %v735_v56, %v734_v54  ;;  %1315 = vmatpush3.bf16.msra.mxu0 %v745_v44 }
 0x3b6   :  { %v746_v59 = vpack.c.bf16 %v733_v57, %v732_v55  ;;  %v1306_v60 = vpop.f32.mrb[24].mxu1 }
 0x3b7   :  { %v706_v61 = vadd.f32 %v1306_v60, %v1070_v31  ;;  %v697_v62 = vpop.f32.mrb[25].mxu1 }
 0x3b8   :  { %v698_v63 = vadd.f32 %v1070_v31, %v697_v62  ;;  %v1307_v0 = vpop.f32.mrb[26].mxu1  ;;  %1316 = vmatprep.subr.bf16.mxu0 %v746_v59 }
 0x3b9   :  { %v709_v1 = vadd.f32 %v1307_v0, %v1070_v31  ;;  %v700_v2 = vpop.f32.mrb[27].mxu1  ;;  %1317 = vmatpush3.bf16.msra.mxu0 %v746_v59  ;;  %v738_v4 = vmax.f32 %v706_v61, 0.0 }
 0x3ba   :  { %v701_v3 = vadd.f32 %v1070_v31, %v700_v2  ;;  %1318 = vmatprep.subr.bf16.mxu0 %v747_v58  ;;  %v736_v6 = vmax.f32 %v698_v63, 0.0 }
 0x3bb   :  { %v739_v5 = vmax.f32 %v709_v1, 0.0 }
 0x3bc   :  { %v737_v7 = vmax.f32 %v701_v3, 0.0 }
 0x3bd   :  { %v749_v8 = vpack.c.bf16 %v739_v5, %v738_v4  ;;  %1319 = vmatpush3.bf16.msra.mxu0 %v747_v58 }
 0x3be   :  { %v748_v9 = vpack.c.bf16 %v737_v7, %v736_v6  ;;  %v1310_v10 = vpop.f32.mrb[28].mxu1 }
 0x3bf   :  { %v722_v11 = vadd.f32 %v1310_v10, %v1070_v31  ;;  %v713_v12 = vpop.f32.mrb[29].mxu1 }
 0x3c0   :  { %v714_v13 = vadd.f32 %v1070_v31, %v713_v12  ;;  %v1311_v16 = vpop.f32.mrb[30].mxu1  ;;  %1320 = vmatprep.subr.bf16.mxu0 %v748_v9 }
 0x3c1   :  { %v725_v17 = vadd.f32 %v1311_v16, %v1070_v31  ;;  %v716_v23 = vpop.f32.mrb[31].mxu1  ;;  %1321 = vmatpush3.bf16.msra.mxu0 %v748_v9  ;;  %v742_v25 = vmax.f32 %v722_v11, 0.0 }
 0x3c2   :  { %v717_v24 = vadd.f32 %v1070_v31, %v716_v23  ;;  %1322 = vmatprep.subr.bf16.mxu0 %v749_v8  ;;  %v740_v27 = vmax.f32 %v714_v13, 0.0  ;;  %v1415_v31 = vld [vmem:[%s1683_s6 + $0x38] sm:$0xff]  }
 0x3c3   :  { %v743_v26 = vmax.f32 %v725_v17, 0.0  ;;  %1358 = vmatprep.subr.bf16.mxu1 %v1415_v31 }
 0x3c4   :  { %v741_v28 = vmax.f32 %v717_v24, 0.0  ;;  %1359 = vmatpush3.bf16.msra.mxu1 %v1415_v31 }
 0x3c5   :  { %v751_v29 = vpack.c.bf16 %v743_v26, %v742_v25  ;;  %1323 = vmatpush3.bf16.msra.mxu0 %v749_v8 }
 0x3c6   :  { %v750_v30 = vpack.c.bf16 %v741_v28, %v740_v27 }
 0x3c8   :  { %1324 = vmatprep.subr.bf16.mxu0 %v750_v30 }
 0x3c9   :  { %1325 = vmatpush3.bf16.msra.mxu0 %v750_v30 }
 0x3ca   :  { %1326 = vmatprep.subr.bf16.mxu0 %v751_v29 }
 0x3cd   :  { %1327 = vmatpush3.bf16.msra.mxu0 %v751_v29 }
 0x3d0   :  { %1329 = vmatmul.mubr.bf16.vlgmr.msra.gmra.mrb[32].mxu0 %v1509_v14 }
 0x3d1   :  { %1332 = vmatprep.mubr.bf16.mxu0 %v1514_v15 }
 0x3d8   :  { %1333 = vmatmul.mubr.bf16.gmra.mrb[36].mxu0 %v1527_v18 }
 0x3d9   :  { %1336 = vmatprep.mubr.bf16.mxu0 %v1532_v19 }
 0x3e0   :  { %1337 = vmatmul.mubr.bf16.gmra.mrb[40].mxu0 %v1539_v20 }
 0x3e1   :  { %1340 = vmatprep.mubr.bf16.mxu0 %v1544_v21 }
 0x3e8   :  { %1341 = vmatmul.mubr.bf16.gmra.mrb[44].mxu0 %v1551_v22 }
 0x4a3   :  { %v1330_v32 = vpop.f32.mrb[32].mxu0 }
 0x4a4   :  { %v786_v14 = vpop.f32.mrb[33].mxu0 }
 0x4a5   :  { %v1331_v33 = vpop.f32.mrb[34].mxu0 }
 0x4a6   :  { %v850_v15 = vpack.c.bf16 %v1331_v33, %v1330_v32  ;;  %v789_v34 = vpop.f32.mrb[35].mxu0 }
 0x4a7   :  { %v849_v18 = vpack.c.bf16 %v789_v34, %v786_v14 }
 0x4a9   :  { %1360 = vmatprep.mubr.bf16.mxu1 %v849_v18 }
 0x4aa   :  { %1361 = vmatmul.mubr.bf16.vlgmr.msra.gmra.mrb[32].mxu1 %v850_v15 }
 0x4ab   :  { %v1334_v19 = vpop.f32.mrb[36].mxu0 }
 0x4ac   :  { %v802_v20 = vpop.f32.mrb[37].mxu0 }
 0x4ad   :  { %v1335_v35 = vpop.f32.mrb[38].mxu0 }
 0x4ae   :  { %v852_v21 = vpack.c.bf16 %v1335_v35, %v1334_v19  ;;  %v805_v36 = vpop.f32.mrb[39].mxu0 }
 0x4af   :  { %v851_v22 = vpack.c.bf16 %v805_v36, %v802_v20 }
 0x4b1   :  { %1364 = vmatprep.mubr.bf16.mxu1 %v851_v22 }
 0x4b2   :  { %1365 = vmatmul.mubr.bf16.gmra.mrb[36].mxu1 %v852_v21 }
 0x4b3   :  { %v1338_v37 = vpop.f32.mrb[40].mxu0 }
 0x4b4   :  { %v818_v38 = vpop.f32.mrb[41].mxu0 }
 0x4b5   :  { %v1339_v39 = vpop.f32.mrb[42].mxu0 }
 0x4b6   :  { %v854_v40 = vpack.c.bf16 %v1339_v39, %v1338_v37  ;;  %v821_v41 = vpop.f32.mrb[43].mxu0 }
 0x4b7   :  { %v853_v42 = vpack.c.bf16 %v821_v41, %v818_v38 }
 0x4b9   :  { %1368 = vmatprep.mubr.bf16.mxu1 %v853_v42 }
 0x4ba   :  { %1369 = vmatmul.mubr.bf16.gmra.mrb[40].mxu1 %v854_v40 }
 0x4bb   :  { %v1342_v43 = vpop.f32.mrb[44].mxu0 }
 0x4bc   :  { %v834_v44 = vpop.f32.mrb[45].mxu0 }
 0x4bd   :  { %v1343_v45 = vpop.f32.mrb[46].mxu0 }
 0x4be   :  { %v856_v46 = vpack.c.bf16 %v1343_v45, %v1342_v43  ;;  %v837_v47 = vpop.f32.mrb[47].mxu0 }
 0x4bf   :  { %v855_v48 = vpack.c.bf16 %v837_v47, %v834_v44 }
 0x4c1   :  { %1372 = vmatprep.mubr.bf16.mxu1 %v855_v48 }
 0x4c2   :  { %1373 = vmatmul.mubr.bf16.gmra.mrb[44].mxu1 %v856_v46 }
 0x57d   :  { %v1362_v50 = vpop.f32.mrb[32].mxu1 }
 0x57e   :  { %v971_v51 = vadd.f32 %v1362_v50, %v1079_v49  ;;  %v962_v52 = vpop.f32.mrb[33].mxu1 }
 0x57f   :  { %v963_v53 = vadd.f32 %v1079_v49, %v962_v52  ;;  %v1363_v54 = vpop.f32.mrb[34].mxu1 }
 0x580   :  { %1027 = vst [vmem:[%s1686_s8 + $0x10] sm:$0xff] %v971_v51  ;;  %v974_v56 = vadd.f32 %v1363_v54, %v1079_v49  ;;  %v965_v55 = vpop.f32.mrb[35].mxu1 }
 0x581   :  { %1025 = vst [vmem:[%s1686_s8] sm:$0xff] %v963_v53  ;;  %v966_v57 = vadd.f32 %v1079_v49, %v965_v55 }
 0x582   :  { %1028 = vst [vmem:[%s1686_s8 + $0x18] sm:$0xff] %v974_v56 }
 0x583   :  { %1026 = vst [vmem:[%s1686_s8 + $0x8] sm:$0xff] %v966_v57 }
 0x585   :  { %v1366_v58 = vpop.f32.mrb[36].mxu1 }
 0x586   :  { %v987_v59 = vadd.f32 %v1366_v58, %v1079_v49  ;;  %v978_v60 = vpop.f32.mrb[37].mxu1 }
 0x587   :  { %v979_v61 = vadd.f32 %v1079_v49, %v978_v60  ;;  %v1367_v62 = vpop.f32.mrb[38].mxu1 }
 0x588   :  { %1031 = vst [vmem:[%s1686_s8 + $0x30] sm:$0xff] %v987_v59  ;;  %v990_v63 = vadd.f32 %v1367_v62, %v1079_v49  ;;  %v981_v0 = vpop.f32.mrb[39].mxu1 }
 0x589   :  { %1029 = vst [vmem:[%s1686_s8 + $0x20] sm:$0xff] %v979_v61  ;;  %v982_v1 = vadd.f32 %v1079_v49, %v981_v0 }
 0x58a   :  { %1032 = vst [vmem:[%s1686_s8 + $0x38] sm:$0xff] %v990_v63 }
 0x58b   :  { %1030 = vst [vmem:[%s1686_s8 + $0x28] sm:$0xff] %v982_v1 }
 0x58d   :  { %v1370_v2 = vpop.f32.mrb[40].mxu1 }
 0x58e   :  { %v1003_v3 = vadd.f32 %v1370_v2, %v1079_v49  ;;  %v994_v4 = vpop.f32.mrb[41].mxu1 }
 0x58f   :  { %v995_v5 = vadd.f32 %v1079_v49, %v994_v4  ;;  %v1371_v6 = vpop.f32.mrb[42].mxu1 }
 0x590   :  { %1035 = vst [vmem:[%s1686_s8 + $0x50] sm:$0xff] %v1003_v3  ;;  %v1006_v7 = vadd.f32 %v1371_v6, %v1079_v49  ;;  %v997_v8 = vpop.f32.mrb[43].mxu1 }
 0x591   :  { %1033 = vst [vmem:[%s1686_s8 + $0x40] sm:$0xff] %v995_v5  ;;  %v998_v9 = vadd.f32 %v1079_v49, %v997_v8 }
 0x592   :  { %1036 = vst [vmem:[%s1686_s8 + $0x58] sm:$0xff] %v1006_v7 }
 0x593   :  { %1034 = vst [vmem:[%s1686_s8 + $0x48] sm:$0xff] %v998_v9 }
 0x595   :  { %v1374_v10 = vpop.f32.mrb[44].mxu1 }
 0x596   :  { %v1019_v11 = vadd.f32 %v1374_v10, %v1079_v49  ;;  %v1010_v12 = vpop.f32.mrb[45].mxu1 }
 0x597   :  { %v1011_v13 = vadd.f32 %v1079_v49, %v1010_v12  ;;  %v1375_v16 = vpop.f32.mrb[46].mxu1 }
 0x598   :  { %1039 = vst [vmem:[%s1686_s8 + $0x70] sm:$0xff] %v1019_v11  ;;  %v1022_v17 = vadd.f32 %v1375_v16, %v1079_v49  ;;  %v1013_v23 = vpop.f32.mrb[47].mxu1 }
 0x599   :  { %1037 = vst [vmem:[%s1686_s8 + $0x60] sm:$0xff] %v1011_v13  ;;  %v1014_v24 = vadd.f32 %v1079_v49, %v1013_v23 }
 0x59a   :  { %1040 = vst [vmem:[%s1686_s8 + $0x78] sm:$0xff] %v1022_v17 }
 0x59b   :  { %1038 = vst [vmem:[%s1686_s8 + $0x68] sm:$0xff] %v1014_v24 }

</bundles_post_ra>
